<compile_context>
chip_gen: v6e
topology: v6e:2x2x1
jax: 0.10.0
libtpu: 0.0.40
codegen_flags: <defaults>
</compile_context>

<pallas_src>
import jax
import jax.numpy as jnp
from jax.experimental import pallas as pl
from jax.experimental.pallas import tpu as pltpu


def _mlp_kernel(xT_ref, w1_ref, b1_ref, w2_ref, b2_ref, o_ref):
    xT = xT_ref[...]            # (D, TB), batch on lanes
    # Hoist bias reads once (insurance against future inner loops).
    b1 = b1_ref[...]            # (12, 1) f32
    b2 = b2_ref[...]            # (8, 1)  f32

    # fc1 (transposed): (12, D) @ (D, TB) -> (12, TB), f32 accumulation on MXU.
    h = jnp.dot(w1_ref[...], xT, preferred_element_type=jnp.float32)
    h = jnp.maximum(h + b1, 0.0)

    # fc2 (transposed): (8, 12) @ (12, TB) -> (8, TB).
    o = jnp.dot(w2_ref[...], h.astype(w2_ref.dtype),
                preferred_element_type=jnp.float32)
    o = jnp.maximum(o + b2, 0.0)

    o_ref[...] = o.astype(o_ref.dtype)


def document_encoder_forward(x, w1, b1, w2, b2, *, block_batch=1024,
                             compute_dtype=None):
    """relu(relu(x @ w1.T + b1) @ w2.T + b2)  ==  DocumentEncoder.forward.

    x  : (B, input_size)
    w1 : (12, input_size)   (PyTorch nn.Linear weight layout: (out, in))
    b1 : (12,)
    w2 : (8, 12)
    b2 : (8,)
    Returns (B, 8) float32.
    """
    B, D = x.shape
    H1, H2 = w1.shape[0], w2.shape[0]
    if compute_dtype is None:
        compute_dtype = x.dtype

    # Lane-dense tiling: batch on the 128-lane axis, TB a multiple of 128.
    tb = min(int(block_batch), pl.cdiv(B, 128) * 128)
    tb = pl.cdiv(tb, 128) * 128
    Bp = pl.cdiv(B, tb) * tb

    xp = x if Bp == B else jnp.pad(x, ((0, Bp - B), (0, 0)))
    xT = xp.astype(compute_dtype).T                      # (D, Bp)
    w1c = w1.astype(compute_dtype)
    w2c = w2.astype(compute_dtype)
    b1c = b1.reshape(H1, 1).astype(jnp.float32)
    b2c = b2.reshape(H2, 1).astype(jnp.float32)

    oT = pl.pallas_call(
        _mlp_kernel,
        out_shape=jax.ShapeDtypeStruct((H2, Bp), jnp.float32),
        grid=(Bp // tb,),
        in_specs=[
            pl.BlockSpec((D, tb), lambda i: (0, i)),     # x^T: tiled over batch
            pl.BlockSpec((H1, D), lambda i: (0, 0)),     # weights/biases: constant
            pl.BlockSpec((H1, 1), lambda i: (0, 0)),
            pl.BlockSpec((H2, H1), lambda i: (0, 0)),
            pl.BlockSpec((H2, 1), lambda i: (0, 0)),
        ],
        out_specs=pl.BlockSpec((H2, tb), lambda i: (0, i)),
        compiler_params=pltpu.CompilerParams(
            dimension_semantics=("parallel",),
        ),
    )(xT, w1c, b1c, w2c, b2c)

    return oT[:, :B].T                                   # (B, 8) f32


def _reference(x, w1, b1, w2, b2, compute_dtype):
    xc = x.astype(compute_dtype)
    h = jnp.dot(xc, w1.astype(compute_dtype).T,
                preferred_element_type=jnp.float32)
    h = jnp.maximum(h + b1.astype(jnp.float32), 0.0)
    o = jnp.dot(h.astype(compute_dtype), w2.astype(compute_dtype).T,
                preferred_element_type=jnp.float32)
    return jnp.maximum(o + b2.astype(jnp.float32), 0.0)


if __name__ == "__main__":
    input_size = 32
    key = jax.random.PRNGKey(0)
    kx, kw1, kb1, kw2, kb2, kx2 = jax.random.split(key, 6)

    # Deterministic params in PyTorch nn.Linear shapes (out, in) / (out,).
    w1 = jax.random.uniform(kw1, (12, input_size), jnp.float32, -1.0, 1.0) / jnp.sqrt(input_size)
    b1 = jax.random.uniform(kb1, (12,), jnp.float32, -1.0, 1.0) / jnp.sqrt(input_size)
    w2 = jax.random.uniform(kw2, (8, 12), jnp.float32, -1.0, 1.0) / jnp.sqrt(12.0)
    b2 = jax.random.uniform(kb2, (8,), jnp.float32, -1.0, 1.0) / jnp.sqrt(12.0)

    # Small batch (pads to one 128-wide tile), f32.
    x_small = jax.random.normal(kx, (8, input_size), jnp.float32)
    out = document_encoder_forward(x_small, w1, b1, w2, b2)
    jax.block_until_ready(out)
    ref = _reference(x_small, w1, b1, w2, b2, jnp.float32)
    assert out.shape == (8, 8)
    assert jnp.allclose(out, ref, atol=2e-5, rtol=1e-5)

    # Ragged larger batch exercising a multi-tile grid (grid=4), f32.
    x_big = jax.random.normal(kx2, (1000, input_size), jnp.float32)
    out_big = document_encoder_forward(x_big, w1, b1, w2, b2, block_batch=256)
    jax.block_until_ready(out_big)
    ref_big = _reference(x_big, w1, b1, w2, b2, jnp.float32)
    assert out_big.shape == (1000, 8)
    assert jnp.allclose(out_big, ref_big, atol=2e-5, rtol=1e-5)

    # bf16 weights/activations with f32 MXU accumulation (HBM-traffic saver).
    out_bf16 = document_encoder_forward(x_big, w1, b1, w2, b2,
                                        block_batch=256,
                                        compute_dtype=jnp.bfloat16)
    jax.block_until_ready(out_bf16)
    ref_bf16 = _reference(x_big, w1, b1, w2, b2, jnp.bfloat16)
    assert jnp.allclose(out_bf16, ref_bf16, atol=1e-3, rtol=1e-2)

    print("KERNEL_OK")
</pallas_src>

<mosaic_0001>
module attributes {stable_mosaic.version = 11 : i64} {
  func.func @_mlp_kernel(%arg0: i32, %arg1: memref<32x128xf32, #tpu.memory_space<vmem>>, %arg2: memref<12x32xf32, #tpu.memory_space<vmem>>, %arg3: memref<12x1xf32, #tpu.memory_space<vmem>>, %arg4: memref<8x12xf32, #tpu.memory_space<vmem>>, %arg5: memref<8x1xf32, #tpu.memory_space<vmem>>, %arg6: memref<8x128xf32, #tpu.memory_space<vmem>>) attributes {dimension_semantics = [#tpu.dimension_semantics<parallel>], iteration_bounds = array<i64: 1>, scalar_prefetch = 0 : i64, scratch_operands = 0 : i64, tpu.core_type = #tpu.core_type<tc>, window_params = [{transform_indices = @transform_0, window_bounds = array<i64: 32, 128>}, {pipeline_mode = #tpu.pipeline_mode<synchronous>, transform_indices = @transform_1, window_bounds = array<i64: 12, 32>}, {pipeline_mode = #tpu.pipeline_mode<synchronous>, transform_indices = @transform_2, window_bounds = array<i64: 12, 1>}, {pipeline_mode = #tpu.pipeline_mode<synchronous>, transform_indices = @transform_3, window_bounds = array<i64: 8, 12>}, {pipeline_mode = #tpu.pipeline_mode<synchronous>, transform_indices = @transform_4, window_bounds = array<i64: 8, 1>}, {transform_indices = @transform_5, window_bounds = array<i64: 8, 128>}]} {
    %c0 = arith.constant 0 : index
    %c0_0 = arith.constant 0 : index
    %0 = vector.load %arg1[%c0, %c0_0] : memref<32x128xf32, #tpu.memory_space<vmem>>, vector<32x128xf32>
    %c0_1 = arith.constant 0 : index
    %c0_2 = arith.constant 0 : index
    %1 = vector.load %arg3[%c0_1, %c0_2] : memref<12x1xf32, #tpu.memory_space<vmem>>, vector<12x1xf32>
    %c0_3 = arith.constant 0 : index
    %c0_4 = arith.constant 0 : index
    %2 = vector.load %arg5[%c0_3, %c0_4] : memref<8x1xf32, #tpu.memory_space<vmem>>, vector<8x1xf32>
    %c0_5 = arith.constant 0 : index
    %c0_6 = arith.constant 0 : index
    %3 = vector.load %arg2[%c0_5, %c0_6] : memref<12x32xf32, #tpu.memory_space<vmem>>, vector<12x32xf32>
    %cst = arith.constant dense<0.000000e+00> : vector<12x128xf32>
    %4 = tpu.matmul %3, %0, %cst {dimension_numbers = #tpu.dot_dimension_numbers<[1], [0], [0], [1], [0, 0, 1, 1], [], []>} : vector<12x32xf32>, vector<32x128xf32>, vector<12x128xf32> -> vector<12x128xf32>
    %5 = vector.broadcast %1 : vector<12x1xf32> to vector<12x128xf32>
    %6 = arith.addf %4, %5 : vector<12x128xf32>
    %cst_7 = arith.constant 0.000000e+00 : f32
    %7 = vector.broadcast %cst_7 : f32 to vector<12x128xf32>
    %8 = arith.maximumf %6, %7 : vector<12x128xf32>
    %c0_8 = arith.constant 0 : index
    %c0_9 = arith.constant 0 : index
    %9 = vector.load %arg4[%c0_8, %c0_9] : memref<8x12xf32, #tpu.memory_space<vmem>>, vector<8x12xf32>
    %cst_10 = arith.constant dense<0.000000e+00> : vector<8x128xf32>
    %10 = tpu.matmul %9, %8, %cst_10 {dimension_numbers = #tpu.dot_dimension_numbers<[1], [0], [0], [1], [0, 0, 1, 1], [], []>} : vector<8x12xf32>, vector<12x128xf32>, vector<8x128xf32> -> vector<8x128xf32>
    %11 = vector.broadcast %2 : vector<8x1xf32> to vector<8x128xf32>
    %12 = arith.addf %10, %11 : vector<8x128xf32>
    %cst_11 = arith.constant 0.000000e+00 : f32
    %13 = vector.broadcast %cst_11 : f32 to vector<8x128xf32>
    %14 = arith.maximumf %12, %13 : vector<8x128xf32>
    %c0_12 = arith.constant 0 : index
    %c0_13 = arith.constant 0 : index
    %15 = vector.load %arg6[%c0_12, %c0_13] : memref<8x128xf32, #tpu.memory_space<vmem>>, vector<8x128xf32>
    tpu.vector_store %arg6[%c0_12, %c0_13], %14 {strides = array<i32>} : memref<8x128xf32, #tpu.memory_space<vmem>>, vector<8x128xf32>,
    return
  }
  func.func @transform_0(%arg0: i32) -> (i32, i32) {
    %c0_i32 = arith.constant 0 : i32
    %c0_i32_0 = arith.constant 0 : i32
    return %c0_i32, %arg0 : i32, i32
  }
  func.func @transform_1(%arg0: i32) -> (i32, i32) {
    %c0_i32 = arith.constant 0 : i32
    %c0_i32_0 = arith.constant 0 : i32
    %c0_i32_1 = arith.constant 0 : i32
    return %c0_i32, %c0_i32_0 : i32, i32
  }
  func.func @transform_2(%arg0: i32) -> (i32, i32) {
    %c0_i32 = arith.constant 0 : i32
    %c0_i32_0 = arith.constant 0 : i32
    %c0_i32_1 = arith.constant 0 : i32
    return %c0_i32, %c0_i32_0 : i32, i32
  }
  func.func @transform_3(%arg0: i32) -> (i32, i32) {
    %c0_i32 = arith.constant 0 : i32
    %c0_i32_0 = arith.constant 0 : i32
    %c0_i32_1 = arith.constant 0 : i32
    return %c0_i32, %c0_i32_0 : i32, i32
  }
  func.func @transform_4(%arg0: i32) -> (i32, i32) {
    %c0_i32 = arith.constant 0 : i32
    %c0_i32_0 = arith.constant 0 : i32
    %c0_i32_1 = arith.constant 0 : i32
    return %c0_i32, %c0_i32_0 : i32, i32
  }
  func.func @transform_5(%arg0: i32) -> (i32, i32) {
    %c0_i32 = arith.constant 0 : i32
    %c0_i32_0 = arith.constant 0 : i32
    return %c0_i32, %arg0 : i32, i32
  }
}

</mosaic_0001>

<bundles_post_ra>
// kernel: tpu_custom_call.1
= control target key start
LH: loop header
LB: loop body
LE: loop exit
PB: predicated region body
PF: predicated region fallthrough
CT: control target
= control target key end

     0   :  { %10 = vsyncpa [#allocation3], 0  ;;  %s386_s0 = inlined_call_operand.hbm [shape: f32[32,128], index: 0, kind: input, shape index: {}]   ;;  %s387_s1 = inlined_call_operand.vmem [shape: f32[12,32], index: 1, kind: input, shape index: {}]   ;;  %s388_s2 = inlined_call_operand.vmem [shape: f32[12,1], index: 2, kind: input, shape index: {}]   ;;  %s389_s3 = inlined_call_operand.vmem [shape: f32[8,12], index: 3, kind: input, shape index: {}]   ;;  %s390_s4 = inlined_call_operand.vmem [shape: f32[8,1], index: 4, kind: input, shape index: {}]   ;;  %s391_s5 = inlined_call_operand.hbm [shape: f32[8,128], index: 5, kind: output, shape index: {}]  }
   0x1   :  { %11 = vsyncpa [#allocation4], 0  ;;  %s323_s18 = smov [#allocation2]  }
   0x2   :  { %s17_s19 = sshll.u32 %s323_s18, 4  ;;  %s18_s19 = int_to_ptr.vmem [resolvable:$true] %s17_s19 }
   0x3   :  { %s287_s20 = scalar_lea.vmem %s18_s19, 512  ;;  %p292_p1 = scmp.lt.s32.totalorder %s18_s19, %s18_s19 }
   0x4   :  { %p288_p0 = scmp.ne.s32.totalorder %s18_s19, %s287_s20  ;;  %p293_p2 = scmp.lt.s32.totalorder %s287_s20, %s287_s20 }
   0x6   :  { %p294_p3 = por %p293_p2, %p292_p1 }
   0x8   :  { %p295_p4 = pnand %p294_p3, %p288_p0 }
   0xa   :  { %298 = shalt.err (!%p295_p4)
}
   0xb   :  { %s324_s21 = smov 128   ;;  %s325_s22 = smov 8  }
   0xc   :  { %23 = dma.hbm_to_vmem [thread:$0]  %s386_s0, 512, %s18_s19, [#allocation3], %s324_s21, %s324_s21, %s325_s22  }
   0xd   :  { %319 = dma.done.wait [#allocation3], 512  }
   0xe   :  { %320 = vsyncadd [#allocation3], 4294966784  ;;  %v326_v0 = vmov 0   ;;  %vm54_vm0 = vcmask 261120   ;;  %v38_v1 = vld [vmem:[#allocation2 + $0x18] sm:$0xff]  ;;  %v37_v2 = vld [vmem:[#allocation2 + $0x10] sm:$0xff] }
   0xf   :  { %277 = vset.pattern.permute.xlu0 %v326_v0  ;;  %278 = vset.pattern.permute.xlu1 %v326_v0  ;;  %v42_v3 = vld [vmem:[%s387_s1] sm:$0xff]  ;;  %v36_v4 = vld [vmem:[#allocation2 + $0x8] sm:$0xff]  ;;  %v327_v9 = vmov 0.0   ;;  %vm328_vm1 = vmmov 0   ;;  %vm148_vm2 = vcmask 1043456   ;;  %vm144_vm3 = vcmask 97280  }
  0x10   :  { %252 = vmatprep.subr.mxu0 %v38_v1  ;;  %260 = vmatprep.mubr.msk.f32.mxu0 %vm54_vm0, %v42_v3  ;;  %v40_v5 = vld [vmem:[%s388_s2 + $0x8] sm:$0xf]  ;;  %v35_v6 = vld [vmem:[#allocation2] sm:$0xff] }
  0x11   :  { %253 = vmatpush3.msra.mxu0 %v38_v1  ;;  %51 = vperm.xlu0 %277, %v40_v5   ;;  %v39_v7 = vld [vmem:[%s388_s2] sm:$0xff]  ;;  %v43_v8 = vld [vmem:[%s387_s1 + $0x8] sm:$0xf] }
  0x12   :  { %254 = vmatprep.subr.mxu0 %v37_v2  ;;  %263 = vmatprep.subr.mxu1 %v327_v9  ;;  %v41_v10 = vld [vmem:[%s390_s4] sm:$0xff]  ;;  %s329_s4 = smov [#allocation5]  }
  0x13   :  { %255 = vmatpush3.msra.mxu0 %v37_v2  ;;  %267 = vmatprep.mubr.msk.f32.mxu1 %vm328_vm1, %v327_v9  ;;  %v138_v19 = vld [vmem:[%s389_s3] sm:$0xff]  ;;  %s230_s9 = sshll.u32 %s329_s4, 4  ;;  %s231_s9 = int_to_ptr.vmem [resolvable:$true] %s230_s9 }
  0x14   :  { %256 = vmatprep.subr.mxu0 %v36_v4  ;;  %141 = vperm.xlu1 %278, %v41_v10   ;;  %s299_s10 = scalar_lea.vmem %s231_s9, 128  ;;  %p304_p6 = scmp.lt.s32.totalorder %s231_s9, %s231_s9 }
  0x15   :  { %257 = vmatpush3.msra.mxu0 %v36_v4  ;;  %46 = vperm.xlu0 %277, %v39_v7   ;;  %p300_p5 = scmp.ne.s32.totalorder %s231_s9, %s299_s10  ;;  %p305_p7 = scmp.lt.s32.totalorder %s299_s10, %s299_s10 }
  0x16   :  { %258 = vmatprep.subr.mxu0 %v35_v6 }
  0x17   :  { %259 = vmatpush3.msra.mxu0 %v35_v6  ;;  %p306_p8 = por %p305_p7, %p304_p6 }
  0x18   :  { %261 = vmatmul.mubr.msk.f32.vlgmr.msra.gmra.mxu0 %vm54_vm0, %v43_v8 }
  0x19   :  { %p307_p9 = pnand %p306_p8, %p300_p5 }
  0x8c   :  { %v52_v11 = vpop.permute.xlu0 %51 }
  0x8f   :  { %v142_v20 = vpop.permute.xlu1 %141 }
  0x90   :  { %v47_v14 = vpop.permute.xlu0 %46 }
  0xd8   :  { %v262_v12 = vpop.f32.mrf.mxu0 }
  0xd9   :  { %v133_v13 = vadd.f32 %v262_v12, %v52_v11 }
  0xda   :  { %v127_v15 = vpop.f32.mrf.mxu0 }
  0xdb   :  { %v137_v16 = vmax.f32 %v133_v13, 0.0  ;;  %v128_v17 = vadd.f32 %v127_v15, %v47_v14 }
  0xdd   :  { %v136_v18 = vmax.f32 %v128_v17, 0.0  ;;  %264 = vmatpush3.msk.msra.mxu1 %vm148_vm2, %v137_v16 }
  0xde   :  { %265 = vmatprep.subr.mxu1 %v327_v9 }
  0xdf   :  { %266 = vmatpush3.msra.mxu1 %v136_v18 }
  0xe0   :  { %268 = vmatmul.mubr.msk.f32.vlgmr.msra.gmra.mxu1 %vm144_vm3, %v138_v19 }
 0x1a0   :  { %v218_v21 = vpop.f32.mrf.mxu1 }
 0x1a1   :  { %v219_v22 = vadd.f32 %v218_v21, %v142_v20 }
 0x1a2   :  { %v269_v23 = vpop.f32.mrf.mxu1 }
 0x1a3   :  { %v222_v24 = vmax.f32 %v219_v22, 0.0 }
 0x1a5   :  { %223 = vst [vmem:[#allocation5] sm:$0xff] %v222_v24 }
 0x1a6   :  { %310 = shalt.err (!%p307_p9)
}
 0x1a7   :  { %233 = dma.vmem_to_hbm [thread:$0]  %s231_s9, 128, %s391_s5, [#allocation4]  }
 0x1a8   :  { %321 = dma.done.wait [#allocation4], 128  }
 0x1a9   :  { %322 = vsyncadd [#allocation4], 4294967168 }
 0x1aa   :  { %237 = vsyncpa [#allocation3], 1 }
 0x1ab   :  { %238 = vsyncpa [#allocation4], 1 }

</bundles_post_ra>
